<compile_context>
chip_gen: v6e
topology: v6e:2x2x1
jax: 0.10.0
libtpu: 0.0.40
codegen_flags: <defaults>
</compile_context>

<pallas_src>
import functools

import jax
import jax.numpy as jnp
import numpy as np
from jax import lax
from jax.experimental import pallas as pl
from jax.experimental.pallas import tpu as pltpu

_STATIC_UNROLL = 4      # inner tile loops with <= this many steps stay unrolled
_MAX_POINT_TILE = 512   # point-tile edge cap (lane-axis tile)
_MAX_BATCH_TILE = 32    # batch elements per grid step cap


def _cdiv(a, b):
    return -(-a // b)


def _loop_tiles(j0, j1, body, acc):
    """Loop `acc = body(j, acc)` for j in [j0, j1); fori_loop when long."""
    count = j1 - j0
    if count <= 0:
        return acc
    if count <= _STATIC_UNROLL:
        for j in range(j0, j1):
            acc = body(j, acc)
        return acc
    return lax.fori_loop(j0, j1, body, acc)


def _emd_kernel(aw_ref, bw_ref, pa_ref, pb_ref, out_ref,
                xa_scr, xb_scr, na2_scr, nb2_scr, *,
                na_true, nb_true, tile_a, tile_b, nta, ntb):
    """One grid step == `bt` batch elements.

    aw_ref : (bt, 1, Na_pad)      per-point weights of cloud A (input dtype)
    bw_ref : (bt, 1, Nb_pad)      per-point weights of cloud B
    pa_ref : (bt, D_pad, Na_pad)  point cloud A, features on sublanes
    pb_ref : (bt, D_pad, Nb_pad)  point cloud B
    out_ref: (1, 1, bt)           energy distance for these batch elements
    xa_scr : (nta, bt, D_pad, tile_a) f32   staged masked cloud A
    xb_scr : (ntb, bt, D_pad, tile_b) f32   staged masked cloud B
    na2_scr: (nta, bt, 1, tile_a) f32       per-point squared norms of A
    nb2_scr: (ntb, bt, 1, tile_b) f32       per-point squared norms of B
    """
    bt = pa_ref.shape[0]
    f32 = jnp.float32

    # ---- Stage masked f32 (D, N)-layout clouds + squared norms into VMEM
    #      scratch once per grid step (full-width static slices only; the
    #      wrapper pads N so every tile is full and marks the padding via
    #      `na_true`/`nb_true` for masking below).
    def stage(pc_ref, w_ref, x_scr, n2_scr, nt, tile):
        for j in range(nt):
            sl = slice(j * tile, (j + 1) * tile)
            x = pc_ref[:, :, sl].astype(f32)
            # masked_fill(pc, w == 0, 0): (bt,1,t) mask broadcasts over sublanes
            x = jnp.where(w_ref[:, :, sl] == 0, 0.0, x)
            x_scr[j] = x
            n2_scr[j] = jnp.sum(x * x, axis=1, keepdims=True)   # (bt, 1, tile)

    stage(pa_ref, aw_ref, xa_scr, na2_scr, nta, tile_a)
    stage(pb_ref, bw_ref, xb_scr, nb2_scr, ntb, tile_b)

    ragged_a = nta * tile_a != na_true
    ragged_b = ntb * tile_b != nb_true

    def row_operands(x_scr, i):
        """Row-tile operands, computed once per (static) row tile."""
        x_t = jnp.swapaxes(x_scr[i], 1, 2)                  # (bt, tn, d_pad)
        x2 = jnp.sum(x_t * x_t, axis=2, keepdims=True)      # (bt, tn, 1)
        return x_t, x2

    def tile_pair_sum(x_t, x2, y_scr, n2y, i, j, t_row, t_col, n_row, n_col,
                      mask_row, mask_col, zero_diag):
        """sum_{p in row tile i, q in col tile j} ||x_p - y_q||  ->  (1, bt)."""
        y = y_scr[j]                                         # (bt, d_pad, tm)
        y2 = n2y[j]                                          # (bt, 1, tm)
        # K = D_pad contraction on the MXU, f32 in / f32 accumulate (tiny next
        # to the EUP-bound sqrt epilogue; avoids bf16 cancellation issues).
        xy = jnp.einsum("bnd,bdm->bnm", x_t, y,
                        preferred_element_type=f32)          # (bt, tn, tm)
        d2 = jnp.maximum(x2 + y2 - 2.0 * xy, 0.0)
        tn, tm = x_t.shape[1], y.shape[2]
        if zero_diag:          # self-distance diagonal is exactly zero
            r = lax.broadcasted_iota(jnp.int32, (1, tn, tm), 1)
            c = lax.broadcasted_iota(jnp.int32, (1, tn, tm), 2)
            d2 = jnp.where(r == c, 0.0, d2)
        if mask_row:           # exclude wrapper-padded points (row side)
            ri = lax.broadcasted_iota(jnp.int32, (1, tn, 1), 1) + i * t_row
            d2 = jnp.where(ri < n_row, d2, 0.0)
        if mask_col:           # exclude wrapper-padded points (col side)
            ci = lax.broadcasted_iota(jnp.int32, (1, 1, tm), 2) + j * t_col
            d2 = jnp.where(ci < n_col, d2, 0.0)
        return jnp.sum(jnp.sqrt(d2), axis=(1, 2))[None, :]   # (1, bt)

    # ---- cross term: sum_{i,j} ||a_i - b_j||
    s_ab = jnp.zeros((1, bt), f32)
    for i in range(nta):
        x_t, x2 = row_operands(xa_scr, i)
        mrow = ragged_a and i == nta - 1

        def cross_body(j, acc, x_t=x_t, x2=x2, i=i, mrow=mrow):
            return acc + tile_pair_sum(x_t, x2, xb_scr, nb2_scr, i, j,
                                       tile_a, tile_b, na_true, nb_true,
                                       mrow, ragged_b, False)

        s_ab = _loop_tiles(0, ntb, cross_body, s_ab)

    # ---- self terms, exploiting symmetry: diagonal tiles once (with the
    #      diagonal zeroed), strictly-upper tiles twice (~1/3 less sqrt work).
    def self_sum(x_scr, n2_scr, n_true, tile, nt, ragged):
        acc = jnp.zeros((1, bt), f32)
        for i in range(nt):
            x_t, x2 = row_operands(x_scr, i)
            mrow = ragged and i == nt - 1
            acc = acc + tile_pair_sum(x_t, x2, x_scr, n2_scr, i, i,
                                      tile, tile, n_true, n_true,
                                      mrow, mrow, True)

            def upper_body(j, a, x_t=x_t, x2=x2, i=i, mrow=mrow):
                return a + 2.0 * tile_pair_sum(x_t, x2, x_scr, n2_scr, i, j,
                                               tile, tile, n_true, n_true,
                                               mrow, ragged, False)

            acc = _loop_tiles(i + 1, nt, upper_body, acc)
        return acc

    s_aa = self_sum(xa_scr, na2_scr, na_true, tile_a, nta, ragged_a)
    s_bb = self_sum(xb_scr, nb2_scr, nb_true, tile_b, ntb, ragged_b)

    # Energy distance with uniform weights 1/Na, 1/Nb (true, unpadded counts).
    na_f, nb_f = float(na_true), float(nb_true)
    loss = (s_ab / (na_f * nb_f)
            - 0.5 * s_aa / (na_f * na_f)
            - 0.5 * s_bb / (nb_f * nb_f))                    # (1, bt)
    out_ref[...] = loss[None].astype(out_ref.dtype)          # (1, 1, bt)


def _tpu_vmem_and_cores():
    """VMEM capacity and a TensorCores-per-chip guess, with safe fallbacks."""
    vmem_cap = 64 * 1024 * 1024            # conservative default (v7x size)
    try:
        info = pltpu.get_tpu_info()
        vmem_cap = int(getattr(info, "vmem_capacity_bytes", vmem_cap))
    except Exception:
        pass
    # v7x: 64 MiB VMEM / 2 TensorCores per chip.  v5e/v6e: 128 MiB / 1 TC.
    cores = 2 if vmem_cap <= 96 * 1024 * 1024 else 1
    return vmem_cap, cores


def energy_movers(a_weights, pc_a, b_weights, pc_b):
    """Pallas-backed EnergyMovers.forward. Returns per-batch loss of shape (B,)."""
    B, Na, D = pc_a.shape
    Nb = pc_b.shape[1]
    itemsize = jnp.dtype(pc_a.dtype).itemsize

    # Feature axis padded up to the sublane granule (zero features do not
    # change any pairwise distance).
    sub = 8 if itemsize >= 4 else (16 if itemsize == 2 else 32)
    d_pad = _cdiv(D, sub) * sub

    # Point tiles (lane axis); N is padded up to a tile multiple in HBM with
    # zero weights/coords and the kernel masks those points out of the sums.
    tile_a = Na if Na <= _MAX_POINT_TILE else _MAX_POINT_TILE
    tile_b = Nb if Nb <= _MAX_POINT_TILE else _MAX_POINT_TILE
    nta, ntb = _cdiv(Na, tile_a), _cdiv(Nb, tile_b)
    na_pad, nb_pad = nta * tile_a, ntb * tile_b

    # Generation-aware VMEM budget (v7x: 64 MiB/TC; v5e/v6e: 128 MiB).
    vmem_cap, cores = _tpu_vmem_and_cores()
    vmem_limit = min(vmem_cap * 3 // 4, 100 * 1024 * 1024)
    budget = int(vmem_limit * 0.8)

    def vmem_usage(bt):
        scr = 4 * bt * (d_pad + 8) * (na_pad + nb_pad)              # clouds+norms
        inp = 2 * bt * (d_pad + 8) * (na_pad + nb_pad) * itemsize   # dbl-buffered
        slab = 4 * 4 * bt * tile_a * tile_b                         # xy/d2/sqrt
        return scr + inp + slab + (2 << 20)                         # + headroom

    bt = min(B, _MAX_BATCH_TILE)
    while bt > 1 and vmem_usage(bt) > budget:
        bt = _cdiv(bt, 2)
    g = _cdiv(B, bt)
    # On 2-TC chips (v7x) keep >= 2 "parallel" grid steps whenever B >= 2,
    # unless the implied batch padding would be expensive on a 1-TC chip.
    if cores >= 2 and g < 2 and B >= 2:
        bt2 = _cdiv(B, 2)
        if 2 * bt2 == B or B >= 6:
            bt = bt2
    g = _cdiv(B, bt)
    b_pad = g * bt

    # Input prep: (B, N, D) -> (B_pad, D_pad, N_pad); weights -> (B_pad, 1, N_pad).
    # Padded batch rows / padded points carry zero weights (fully masked).
    def prep(pc, w, n, n_pad):
        x = jnp.swapaxes(pc, 1, 2)                                  # (B, D, N)
        x = jnp.pad(x, ((0, b_pad - B), (0, d_pad - D), (0, n_pad - n)))
        w = jnp.pad(w[:, None, :], ((0, b_pad - B), (0, 0), (0, n_pad - n)))
        return x, w

    pa, aw = prep(pc_a, a_weights, Na, na_pad)
    pb, bw = prep(pc_b, b_weights, Nb, nb_pad)

    kernel = functools.partial(
        _emd_kernel, na_true=Na, nb_true=Nb,
        tile_a=tile_a, tile_b=tile_b, nta=nta, ntb=ntb)

    out = pl.pallas_call(
        kernel,
        out_shape=jax.ShapeDtypeStruct((g, 1, bt), jnp.float32),
        grid_spec=pltpu.PrefetchScalarGridSpec(
            num_scalar_prefetch=0,
            grid=(g,),
            in_specs=[
                pl.BlockSpec((bt, 1, na_pad), lambda i: (i, 0, 0)),
                pl.BlockSpec((bt, 1, nb_pad), lambda i: (i, 0, 0)),
                pl.BlockSpec((bt, d_pad, na_pad), lambda i: (i, 0, 0)),
                pl.BlockSpec((bt, d_pad, nb_pad), lambda i: (i, 0, 0)),
            ],
            out_specs=pl.BlockSpec((1, 1, bt), lambda i: (i, 0, 0)),
            scratch_shapes=[
                pltpu.VMEM((nta, bt, d_pad, tile_a), jnp.float32),
                pltpu.VMEM((ntb, bt, d_pad, tile_b), jnp.float32),
                pltpu.VMEM((nta, bt, 1, tile_a), jnp.float32),
                pltpu.VMEM((ntb, bt, 1, tile_b), jnp.float32),
            ],
        ),
        compiler_params=pltpu.CompilerParams(
            dimension_semantics=("parallel",),
            vmem_limit_bytes=int(vmem_limit),
        ),
    )(aw, bw, pa, pb)

    return out.reshape(g * bt)[:B]


def energy_movers_ref(a_weights, pc_a, b_weights, pc_b):
    """Pure-JAX reference for correctness checking."""
    xa = jnp.where((a_weights == 0.0)[..., None], 0.0, pc_a)
    xb = jnp.where((b_weights == 0.0)[..., None], 0.0, pc_b)

    def cdist(x, y):
        d2 = jnp.sum((x[:, :, None, :] - y[:, None, :, :]) ** 2, axis=-1)
        return jnp.sqrt(jnp.maximum(d2, 0.0))

    na, nb = xa.shape[1], xb.shape[1]
    d_ab = cdist(xa, xb)
    d_aa = cdist(xa, xa)
    d_bb = cdist(xb, xb)
    return (d_ab.sum((1, 2)) / (na * nb)
            - 0.5 * d_aa.sum((1, 2)) / (na * na)
            - 0.5 * d_bb.sum((1, 2)) / (nb * nb))


if __name__ == "__main__":
    key = jax.random.PRNGKey(0)
    k1, k2, k3, k4 = jax.random.split(key, 4)

    B, Na, Nb, D = 2, 16, 16, 4
    pc_a = jax.random.normal(k1, (B, Na, D), dtype=jnp.float32)
    pc_b = jax.random.normal(k2, (B, Nb, D), dtype=jnp.float32)
    a_weights = jax.random.uniform(k3, (B, Na), dtype=jnp.float32)
    b_weights = jax.random.uniform(k4, (B, Nb), dtype=jnp.float32)
    # Zero out some weights to exercise the masked_fill path (padded points).
    a_weights = jnp.where(a_weights < 0.3, 0.0, a_weights)
    b_weights = jnp.where(b_weights < 0.3, 0.0, b_weights)

    out = energy_movers(a_weights, pc_a, b_weights, pc_b)
    out = jax.block_until_ready(out)

    ref = energy_movers_ref(a_weights, pc_a, b_weights, pc_b)
    np.testing.assert_allclose(np.asarray(out), np.asarray(ref),
                               rtol=1e-4, atol=1e-5)
    print("KERNEL_OK")
</pallas_src>

<mosaic_0001>
module attributes {stable_mosaic.version = 11 : i64} {
  func.func @_emd_kernel(%arg0: i32, %arg1: memref<1x1x16xf32, #tpu.memory_space<vmem>>, %arg2: memref<1x1x16xf32, #tpu.memory_space<vmem>>, %arg3: memref<1x8x16xf32, #tpu.memory_space<vmem>>, %arg4: memref<1x8x16xf32, #tpu.memory_space<vmem>>, %arg5: memref<1x1x1xf32, #tpu.memory_space<vmem>>, %arg6: memref<1x1x8x16xf32, #tpu.memory_space<vmem>>, %arg7: memref<1x1x8x16xf32, #tpu.memory_space<vmem>>, %arg8: memref<1x1x1x16xf32, #tpu.memory_space<vmem>>, %arg9: memref<1x1x1x16xf32, #tpu.memory_space<vmem>>) attributes {dimension_semantics = [#tpu.dimension_semantics<parallel>], iteration_bounds = array<i64: 2>, scalar_prefetch = 0 : i64, scratch_operands = 4 : i64, tpu.core_type = #tpu.core_type<tc>, window_params = [{transform_indices = @transform_0, window_bounds = array<i64: 1, 1, 16>}, {transform_indices = @transform_1, window_bounds = array<i64: 1, 1, 16>}, {transform_indices = @transform_2, window_bounds = array<i64: 1, 8, 16>}, {transform_indices = @transform_3, window_bounds = array<i64: 1, 8, 16>}, {transform_indices = @transform_4, window_bounds = array<i64: 1, 1, 1>}]} {
    %c0 = arith.constant 0 : index
    %c0_0 = arith.constant 0 : index
    %c0_1 = arith.constant 0 : index
    %0 = vector.load %arg3[%c0, %c0_0, %c0_1] : memref<1x8x16xf32, #tpu.memory_space<vmem>>, vector<1x8x16xf32>
    %c0_2 = arith.constant 0 : index
    %c0_3 = arith.constant 0 : index
    %c0_4 = arith.constant 0 : index
    %1 = vector.load %arg1[%c0_2, %c0_3, %c0_4] : memref<1x1x16xf32, #tpu.memory_space<vmem>>, vector<1x1x16xf32>
    %cst = arith.constant 0.000000e+00 : f32
    %2 = vector.broadcast %cst : f32 to vector<1x1x16xf32>
    %3 = arith.cmpf oeq, %1, %2 : vector<1x1x16xf32>
    %cst_5 = arith.constant 0.000000e+00 : f32
    %4 = vector.shape_cast %3 : vector<1x1x16xi1> to vector<1x1x16xi1>
    %5 = vector.broadcast %4 : vector<1x1x16xi1> to vector<1x8x16xi1>
    %6 = vector.broadcast %cst_5 : f32 to vector<1x8x16xf32>
    %7 = arith.select %5, %6, %0 : vector<1x8x16xi1>, vector<1x8x16xf32>
    %c0_6 = arith.constant 0 : index
    %c0_7 = arith.constant 0 : index
    %c0_8 = arith.constant 0 : index
    %c0_9 = arith.constant 0 : index
    %8 = vector.load %arg6[%c0_6, %c0_7, %c0_8, %c0_9] : memref<1x1x8x16xf32, #tpu.memory_space<vmem>>, vector<1x1x8x16xf32>
    %9 = vector.shape_cast %8 : vector<1x1x8x16xf32> to vector<1x8x16xf32>
    %10 = vector.shape_cast %7 : vector<1x8x16xf32> to vector<1x1x8x16xf32>
    tpu.vector_store %arg6[%c0_6, %c0_7, %c0_8, %c0_9], %10 {strides = array<i32>} : memref<1x1x8x16xf32, #tpu.memory_space<vmem>>, vector<1x1x8x16xf32>,
    %11 = arith.mulf %7, %7 : vector<1x8x16xf32>
    %cst_10 = arith.constant dense<0.000000e+00> : vector<1x16xf32>
    %12 = vector.multi_reduction <add>, %11, %cst_10 [1] : vector<1x8x16xf32> to vector<1x16xf32>
    %13 = vector.shape_cast %12 : vector<1x16xf32> to vector<1x1x16xf32>
    %c0_11 = arith.constant 0 : index
    %c0_12 = arith.constant 0 : index
    %c0_13 = arith.constant 0 : index
    %c0_14 = arith.constant 0 : index
    %14 = vector.load %arg8[%c0_11, %c0_12, %c0_13, %c0_14] : memref<1x1x1x16xf32, #tpu.memory_space<vmem>>, vector<1x1x1x16xf32>
    %15 = vector.shape_cast %14 : vector<1x1x1x16xf32> to vector<1x1x16xf32>
    %16 = vector.shape_cast %13 : vector<1x1x16xf32> to vector<1x1x1x16xf32>
    tpu.vector_store %arg8[%c0_11, %c0_12, %c0_13, %c0_14], %16 {strides = array<i32>} : memref<1x1x1x16xf32, #tpu.memory_space<vmem>>, vector<1x1x1x16xf32>,
    %c0_15 = arith.constant 0 : index
    %c0_16 = arith.constant 0 : index
    %c0_17 = arith.constant 0 : index
    %17 = vector.load %arg4[%c0_15, %c0_16, %c0_17] : memref<1x8x16xf32, #tpu.memory_space<vmem>>, vector<1x8x16xf32>
    %c0_18 = arith.constant 0 : index
    %c0_19 = arith.constant 0 : index
    %c0_20 = arith.constant 0 : index
    %18 = vector.load %arg2[%c0_18, %c0_19, %c0_20] : memref<1x1x16xf32, #tpu.memory_space<vmem>>, vector<1x1x16xf32>
    %cst_21 = arith.constant 0.000000e+00 : f32
    %19 = vector.broadcast %cst_21 : f32 to vector<1x1x16xf32>
    %20 = arith.cmpf oeq, %18, %19 : vector<1x1x16xf32>
    %cst_22 = arith.constant 0.000000e+00 : f32
    %21 = vector.shape_cast %20 : vector<1x1x16xi1> to vector<1x1x16xi1>
    %22 = vector.broadcast %21 : vector<1x1x16xi1> to vector<1x8x16xi1>
    %23 = vector.broadcast %cst_22 : f32 to vector<1x8x16xf32>
    %24 = arith.select %22, %23, %17 : vector<1x8x16xi1>, vector<1x8x16xf32>
    %c0_23 = arith.constant 0 : index
    %c0_24 = arith.constant 0 : index
    %c0_25 = arith.constant 0 : index
    %c0_26 = arith.constant 0 : index
    %25 = vector.load %arg7[%c0_23, %c0_24, %c0_25, %c0_26] : memref<1x1x8x16xf32, #tpu.memory_space<vmem>>, vector<1x1x8x16xf32>
    %26 = vector.shape_cast %25 : vector<1x1x8x16xf32> to vector<1x8x16xf32>
    %27 = vector.shape_cast %24 : vector<1x8x16xf32> to vector<1x1x8x16xf32>
    tpu.vector_store %arg7[%c0_23, %c0_24, %c0_25, %c0_26], %27 {strides = array<i32>} : memref<1x1x8x16xf32, #tpu.memory_space<vmem>>, vector<1x1x8x16xf32>,
    %28 = arith.mulf %24, %24 : vector<1x8x16xf32>
    %cst_27 = arith.constant dense<0.000000e+00> : vector<1x16xf32>
    %29 = vector.multi_reduction <add>, %28, %cst_27 [1] : vector<1x8x16xf32> to vector<1x16xf32>
    %30 = vector.shape_cast %29 : vector<1x16xf32> to vector<1x1x16xf32>
    %c0_28 = arith.constant 0 : index
    %c0_29 = arith.constant 0 : index
    %c0_30 = arith.constant 0 : index
    %c0_31 = arith.constant 0 : index
    %31 = vector.load %arg9[%c0_28, %c0_29, %c0_30, %c0_31] : memref<1x1x1x16xf32, #tpu.memory_space<vmem>>, vector<1x1x1x16xf32>
    %32 = vector.shape_cast %31 : vector<1x1x1x16xf32> to vector<1x1x16xf32>
    %33 = vector.shape_cast %30 : vector<1x1x16xf32> to vector<1x1x1x16xf32>
    tpu.vector_store %arg9[%c0_28, %c0_29, %c0_30, %c0_31], %33 {strides = array<i32>} : memref<1x1x1x16xf32, #tpu.memory_space<vmem>>, vector<1x1x1x16xf32>,
    %cst_32 = arith.constant 0.000000e+00 : f32
    %34 = vector.broadcast %cst_32 : f32 to vector<1x1xf32>
    %c0_33 = arith.constant 0 : index
    %c0_34 = arith.constant 0 : index
    %c0_35 = arith.constant 0 : index
    %c0_36 = arith.constant 0 : index
    %35 = vector.load %arg6[%c0_33, %c0_34, %c0_35, %c0_36] : memref<1x1x8x16xf32, #tpu.memory_space<vmem>>, vector<1x1x8x16xf32>
    %36 = vector.shape_cast %35 : vector<1x1x8x16xf32> to vector<1x8x16xf32>
    %37 = tpu.transpose %36, [0, 2, 1] : vector<1x8x16xf32> -> vector<1x16x8xf32>
    %38 = arith.mulf %37, %37 : vector<1x16x8xf32>
    %cst_37 = arith.constant dense<0.000000e+00> : vector<1x16xf32>
    %39 = vector.multi_reduction <add>, %38, %cst_37 [2] : vector<1x16x8xf32> to vector<1x16xf32>
    %40 = vector.shape_cast %39 : vector<1x16xf32> to vector<1x16x1xf32>
    %c0_38 = arith.constant 0 : index
    %c0_39 = arith.constant 0 : index
    %c0_40 = arith.constant 0 : index
    %c0_41 = arith.constant 0 : index
    %41 = vector.load %arg7[%c0_38, %c0_39, %c0_40, %c0_41] : memref<1x1x8x16xf32, #tpu.memory_space<vmem>>, vector<1x1x8x16xf32>
    %42 = vector.shape_cast %41 : vector<1x1x8x16xf32> to vector<1x8x16xf32>
    %c0_42 = arith.constant 0 : index
    %c0_43 = arith.constant 0 : index
    %c0_44 = arith.constant 0 : index
    %c0_45 = arith.constant 0 : index
    %43 = vector.load %arg9[%c0_42, %c0_43, %c0_44, %c0_45] : memref<1x1x1x16xf32, #tpu.memory_space<vmem>>, vector<1x1x1x16xf32>
    %44 = vector.shape_cast %43 : vector<1x1x1x16xf32> to vector<1x1x16xf32>
    "tpu.trace_start"() <{level = 10 : i32, message = "bnd,bdm->bnm"}> : () -> ()
    %cst_46 = arith.constant dense<0.000000e+00> : vector<1x16x16xf32>
    %45 = tpu.matmul %37, %42, %cst_46 {dimension_numbers = #tpu.dot_dimension_numbers<[2], [1], [1], [2], [0, 0, 0, 1, 1, 2], [0], [0]>} : vector<1x16x8xf32>, vector<1x8x16xf32>, vector<1x16x16xf32> -> vector<1x16x16xf32>
    "tpu.trace_stop"() : () -> ()
    %46 = vector.broadcast %40 : vector<1x16x1xf32> to vector<1x16x16xf32>
    %47 = vector.broadcast %44 : vector<1x1x16xf32> to vector<1x16x16xf32>
    %48 = arith.addf %46, %47 : vector<1x16x16xf32>
    %cst_47 = arith.constant 2.000000e+00 : f32
    %49 = vector.broadcast %cst_47 : f32 to vector<1x16x16xf32>
    %50 = arith.mulf %49, %45 : vector<1x16x16xf32>
    %51 = arith.subf %48, %50 : vector<1x16x16xf32>
    %cst_48 = arith.constant 0.000000e+00 : f32
    %52 = vector.broadcast %cst_48 : f32 to vector<1x16x16xf32>
    %53 = arith.maximumf %51, %52 : vector<1x16x16xf32>
    %54 = math.sqrt %53 : vector<1x16x16xf32>
    %cst_49 = arith.constant dense<0.000000e+00> : vector<1xf32>
    %55 = vector.multi_reduction <add>, %54, %cst_49 [1, 2] : vector<1x16x16xf32> to vector<1xf32>
    %56 = vector.shape_cast %55 : vector<1xf32> to vector<1x1xf32>
    %57 = arith.addf %34, %56 : vector<1x1xf32>
    %cst_50 = arith.constant 0.000000e+00 : f32
    %58 = vector.broadcast %cst_50 : f32 to vector<1x1xf32>
    %c0_51 = arith.constant 0 : index
    %c0_52 = arith.constant 0 : index
    %c0_53 = arith.constant 0 : index
    %c0_54 = arith.constant 0 : index
    %59 = vector.load %arg6[%c0_51, %c0_52, %c0_53, %c0_54] : memref<1x1x8x16xf32, #tpu.memory_space<vmem>>, vector<1x1x8x16xf32>
    %60 = vector.shape_cast %59 : vector<1x1x8x16xf32> to vector<1x8x16xf32>
    %61 = tpu.transpose %60, [0, 2, 1] : vector<1x8x16xf32> -> vector<1x16x8xf32>
    %62 = arith.mulf %61, %61 : vector<1x16x8xf32>
    %cst_55 = arith.constant dense<0.000000e+00> : vector<1x16xf32>
    %63 = vector.multi_reduction <add>, %62, %cst_55 [2] : vector<1x16x8xf32> to vector<1x16xf32>
    %64 = vector.shape_cast %63 : vector<1x16xf32> to vector<1x16x1xf32>
    %c0_56 = arith.constant 0 : index
    %c0_57 = arith.constant 0 : index
    %c0_58 = arith.constant 0 : index
    %c0_59 = arith.constant 0 : index
    %65 = vector.load %arg6[%c0_56, %c0_57, %c0_58, %c0_59] : memref<1x1x8x16xf32, #tpu.memory_space<vmem>>, vector<1x1x8x16xf32>
    %66 = vector.shape_cast %65 : vector<1x1x8x16xf32> to vector<1x8x16xf32>
    %c0_60 = arith.constant 0 : index
    %c0_61 = arith.constant 0 : index
    %c0_62 = arith.constant 0 : index
    %c0_63 = arith.constant 0 : index
    %67 = vector.load %arg8[%c0_60, %c0_61, %c0_62, %c0_63] : memref<1x1x1x16xf32, #tpu.memory_space<vmem>>, vector<1x1x1x16xf32>
    %68 = vector.shape_cast %67 : vector<1x1x1x16xf32> to vector<1x1x16xf32>
    "tpu.trace_start"() <{level = 10 : i32, message = "bnd,bdm->bnm"}> : () -> ()
    %cst_64 = arith.constant dense<0.000000e+00> : vector<1x16x16xf32>
    %69 = tpu.matmul %61, %66, %cst_64 {dimension_numbers = #tpu.dot_dimension_numbers<[2], [1], [1], [2], [0, 0, 0, 1, 1, 2], [0], [0]>} : vector<1x16x8xf32>, vector<1x8x16xf32>, vector<1x16x16xf32> -> vector<1x16x16xf32>
    "tpu.trace_stop"() : () -> ()
    %70 = vector.broadcast %64 : vector<1x16x1xf32> to vector<1x16x16xf32>
    %71 = vector.broadcast %68 : vector<1x1x16xf32> to vector<1x16x16xf32>
    %72 = arith.addf %70, %71 : vector<1x16x16xf32>
    %cst_65 = arith.constant 2.000000e+00 : f32
    %73 = vector.broadcast %cst_65 : f32 to vector<1x16x16xf32>
    %74 = arith.mulf %73, %69 : vector<1x16x16xf32>
    %75 = arith.subf %72, %74 : vector<1x16x16xf32>
    %cst_66 = arith.constant 0.000000e+00 : f32
    %76 = vector.broadcast %cst_66 : f32 to vector<1x16x16xf32>
    %77 = arith.maximumf %75, %76 : vector<1x16x16xf32>
    %78 = tpu.iota {dimensions = array<i32: 1>} : vector<1x16x16xi32>
    %79 = tpu.iota {dimensions = array<i32: 2>} : vector<1x16x16xi32>
    %80 = arith.cmpi eq, %78, %79 : vector<1x16x16xi32>
    %cst_67 = arith.constant 0.000000e+00 : f32
    %81 = vector.broadcast %cst_67 : f32 to vector<1x16x16xf32>
    %82 = arith.select %80, %81, %77 : vector<1x16x16xi1>, vector<1x16x16xf32>
    %83 = math.sqrt %82 : vector<1x16x16xf32>
    %cst_68 = arith.constant dense<0.000000e+00> : vector<1xf32>
    %84 = vector.multi_reduction <add>, %83, %cst_68 [1, 2] : vector<1x16x16xf32> to vector<1xf32>
    %85 = vector.shape_cast %84 : vector<1xf32> to vector<1x1xf32>
    %86 = arith.addf %58, %85 : vector<1x1xf32>
    %cst_69 = arith.constant 0.000000e+00 : f32
    %87 = vector.broadcast %cst_69 : f32 to vector<1x1xf32>
    %c0_70 = arith.constant 0 : index
    %c0_71 = arith.constant 0 : index
    %c0_72 = arith.constant 0 : index
    %c0_73 = arith.constant 0 : index
    %88 = vector.load %arg7[%c0_70, %c0_71, %c0_72, %c0_73] : memref<1x1x8x16xf32, #tpu.memory_space<vmem>>, vector<1x1x8x16xf32>
    %89 = vector.shape_cast %88 : vector<1x1x8x16xf32> to vector<1x8x16xf32>
    %90 = tpu.transpose %89, [0, 2, 1] : vector<1x8x16xf32> -> vector<1x16x8xf32>
    %91 = arith.mulf %90, %90 : vector<1x16x8xf32>
    %cst_74 = arith.constant dense<0.000000e+00> : vector<1x16xf32>
    %92 = vector.multi_reduction <add>, %91, %cst_74 [2] : vector<1x16x8xf32> to vector<1x16xf32>
    %93 = vector.shape_cast %92 : vector<1x16xf32> to vector<1x16x1xf32>
    %c0_75 = arith.constant 0 : index
    %c0_76 = arith.constant 0 : index
    %c0_77 = arith.constant 0 : index
    %c0_78 = arith.constant 0 : index
    %94 = vector.load %arg7[%c0_75, %c0_76, %c0_77, %c0_78] : memref<1x1x8x16xf32, #tpu.memory_space<vmem>>, vector<1x1x8x16xf32>
    %95 = vector.shape_cast %94 : vector<1x1x8x16xf32> to vector<1x8x16xf32>
    %c0_79 = arith.constant 0 : index
    %c0_80 = arith.constant 0 : index
    %c0_81 = arith.constant 0 : index
    %c0_82 = arith.constant 0 : index
    %96 = vector.load %arg9[%c0_79, %c0_80, %c0_81, %c0_82] : memref<1x1x1x16xf32, #tpu.memory_space<vmem>>, vector<1x1x1x16xf32>
    %97 = vector.shape_cast %96 : vector<1x1x1x16xf32> to vector<1x1x16xf32>
    "tpu.trace_start"() <{level = 10 : i32, message = "bnd,bdm->bnm"}> : () -> ()
    %cst_83 = arith.constant dense<0.000000e+00> : vector<1x16x16xf32>
    %98 = tpu.matmul %90, %95, %cst_83 {dimension_numbers = #tpu.dot_dimension_numbers<[2], [1], [1], [2], [0, 0, 0, 1, 1, 2], [0], [0]>} : vector<1x16x8xf32>, vector<1x8x16xf32>, vector<1x16x16xf32> -> vector<1x16x16xf32>
    "tpu.trace_stop"() : () -> ()
    %99 = vector.broadcast %93 : vector<1x16x1xf32> to vector<1x16x16xf32>
    %100 = vector.broadcast %97 : vector<1x1x16xf32> to vector<1x16x16xf32>
    %101 = arith.addf %99, %100 : vector<1x16x16xf32>
    %cst_84 = arith.constant 2.000000e+00 : f32
    %102 = vector.broadcast %cst_84 : f32 to vector<1x16x16xf32>
    %103 = arith.mulf %102, %98 : vector<1x16x16xf32>
    %104 = arith.subf %101, %103 : vector<1x16x16xf32>
    %cst_85 = arith.constant 0.000000e+00 : f32
    %105 = vector.broadcast %cst_85 : f32 to vector<1x16x16xf32>
    %106 = arith.maximumf %104, %105 : vector<1x16x16xf32>
    %107 = tpu.iota {dimensions = array<i32: 1>} : vector<1x16x16xi32>
    %108 = tpu.iota {dimensions = array<i32: 2>} : vector<1x16x16xi32>
    %109 = arith.cmpi eq, %107, %108 : vector<1x16x16xi32>
    %cst_86 = arith.constant 0.000000e+00 : f32
    %110 = vector.broadcast %cst_86 : f32 to vector<1x16x16xf32>
    %111 = arith.select %109, %110, %106 : vector<1x16x16xi1>, vector<1x16x16xf32>
    %112 = math.sqrt %111 : vector<1x16x16xf32>
    %cst_87 = arith.constant dense<0.000000e+00> : vector<1xf32>
    %113 = vector.multi_reduction <add>, %112, %cst_87 [1, 2] : vector<1x16x16xf32> to vector<1xf32>
    %114 = vector.shape_cast %113 : vector<1xf32> to vector<1x1xf32>
    %115 = arith.addf %87, %114 : vector<1x1xf32>
    %cst_88 = arith.constant 2.560000e+02 : f32
    %116 = vector.broadcast %cst_88 : f32 to vector<1x1xf32>
    %117 = arith.divf %57, %116 : vector<1x1xf32>
    %cst_89 = arith.constant 5.000000e-01 : f32
    %118 = vector.broadcast %cst_89 : f32 to vector<1x1xf32>
    %119 = arith.mulf %118, %86 : vector<1x1xf32>
    %cst_90 = arith.constant 2.560000e+02 : f32
    %120 = vector.broadcast %cst_90 : f32 to vector<1x1xf32>
    %121 = arith.divf %119, %120 : vector<1x1xf32>
    %122 = arith.subf %117, %121 : vector<1x1xf32>
    %cst_91 = arith.constant 5.000000e-01 : f32
    %123 = vector.broadcast %cst_91 : f32 to vector<1x1xf32>
    %124 = arith.mulf %123, %115 : vector<1x1xf32>
    %cst_92 = arith.constant 2.560000e+02 : f32
    %125 = vector.broadcast %cst_92 : f32 to vector<1x1xf32>
    %126 = arith.divf %124, %125 : vector<1x1xf32>
    %127 = arith.subf %122, %126 : vector<1x1xf32>
    %128 = vector.shape_cast %127 : vector<1x1xf32> to vector<1x1x1xf32>
    %c0_93 = arith.constant 0 : index
    %c0_94 = arith.constant 0 : index
    %c0_95 = arith.constant 0 : index
    %129 = vector.load %arg5[%c0_93, %c0_94, %c0_95] : memref<1x1x1xf32, #tpu.memory_space<vmem>>, vector<1x1x1xf32>
    tpu.vector_store %arg5[%c0_93, %c0_94, %c0_95], %128 {strides = array<i32>} : memref<1x1x1xf32, #tpu.memory_space<vmem>>, vector<1x1x1xf32>,
    return
  }
  func.func @transform_0(%arg0: i32) -> (i32, i32, i32) {
    %c0_i32 = arith.constant 0 : i32
    %c0_i32_0 = arith.constant 0 : i32
    %c0_i32_1 = arith.constant 0 : i32
    return %arg0, %c0_i32, %c0_i32_0 : i32, i32, i32
  }
  func.func @transform_1(%arg0: i32) -> (i32, i32, i32) {
    %c0_i32 = arith.constant 0 : i32
    %c0_i32_0 = arith.constant 0 : i32
    %c0_i32_1 = arith.constant 0 : i32
    return %arg0, %c0_i32, %c0_i32_0 : i32, i32, i32
  }
  func.func @transform_2(%arg0: i32) -> (i32, i32, i32) {
    %c0_i32 = arith.constant 0 : i32
    %c0_i32_0 = arith.constant 0 : i32
    %c0_i32_1 = arith.constant 0 : i32
    return %arg0, %c0_i32, %c0_i32_0 : i32, i32, i32
  }
  func.func @transform_3(%arg0: i32) -> (i32, i32, i32) {
    %c0_i32 = arith.constant 0 : i32
    %c0_i32_0 = arith.constant 0 : i32
    %c0_i32_1 = arith.constant 0 : i32
    return %arg0, %c0_i32, %c0_i32_0 : i32, i32, i32
  }
  func.func @transform_4(%arg0: i32) -> (i32, i32, i32) {
    %c0_i32 = arith.constant 0 : i32
    %c0_i32_0 = arith.constant 0 : i32
    %c0_i32_1 = arith.constant 0 : i32
    return %arg0, %c0_i32, %c0_i32_0 : i32, i32, i32
  }
}

</mosaic_0001>

<bundles_post_ra>
// kernel: tpu_custom_call.1
= control target key start
LH: loop header
LB: loop body
LE: loop exit
PB: predicated region body
PF: predicated region fallthrough
CT: control target
= control target key end

     0   :  { %9 = vsyncpa [#allocation7], 0  ;;  %s1517_s0 = inlined_call_operand.hbm [shape: f32[2,1,16], index: 0, kind: input, shape index: {}]   ;;  %s1518_s1 = inlined_call_operand.hbm [shape: f32[2,1,16], index: 1, kind: input, shape index: {}]   ;;  %s1519_s2 = inlined_call_operand.hbm [shape: f32[2,8,16], index: 2, kind: input, shape index: {}]   ;;  %s1520_s3 = inlined_call_operand.hbm [shape: f32[2,8,16], index: 3, kind: input, shape index: {}]   ;;  %s1521_s4 = inlined_call_operand.vmem [shape: f32[2,1,1], index: 4, kind: output, shape index: {}]  }
   0x1   :  { %11 = vsyncpa [#allocation7 + $0x1], 0 }
   0x2   :  { %12 = vsyncpa [#allocation9], 0 }
   0x3   :  { %14 = vsyncpa [#allocation9 + $0x1], 0 }
   0x4   :  { %15 = vsyncpa [#allocation12], 0 }
   0x5   :  { %17 = vsyncpa [#allocation12 + $0x1], 0  ;;  %s1287_s15 = smov 0   ;;  %s1289_s16 = smov 0  }
   0x6   :  { %s1291_s17 = smov 0   ;;  %s1293_s18 = smov 0  }
   0x7 LB: > { %s1306_s19 = sadd.s32 4294967295, %s1255_s18   ;;  %s1309_s20 = sadd.s32 1, %s1255_s18   ;;  %s1255_s18 = sphi %s1293_s18, %s1533_s18   ;;  %s1251_s17 = sphi %s1291_s17, %s1532_s17   ;;  %s1247_s16 = sphi %s1289_s16, %s1531_s16   ;;  %s1243_s15 = sphi %s1287_s15, %s1530_s15  }
   0x8   : > { %s27_s21 = ssub.s32 %s1255_s18, %s1309_s20  ;;  %s30_s22 = sadd.s32 1, %s1251_s17 }
   0x9   : > { %p28_p0 = scmp.eq.s32.totalorder %s27_s21, 0  ;;  %p37_p1 = scmp.ne.s32.totalorder %s1251_s17, %s1247_s16 }
   0xa   : > { %p38_p2 = scmp.eq.s32.totalorder %s1255_s18, 0  ;;  %p43_p3 = scmp.ne.s32.totalorder %s1247_s16, %s1243_s15 }
   0xb   : > { %s1319_s23 = scalar_select %p28_p0, %s1251_s17, %s30_s22  }
   0xc   : > { %p39_p4 = por %p38_p2, %p37_p1  ;;  %p44_p5 = scmp.eq.s32.totalorder %s1306_s19, 0 }
   0xd   : > { %p1054_p6 = scmp.lt.s32.totalorder %s1255_s18, 2  ;;  %s1328_s25 = sand.u32 1, %s1251_s17  }
   0xe   : > { %p1323_p7 = por %p44_p5, %p43_p3  ;;  %s989_s26 = sshll.u32 %s1255_s18, 4 }
   0xf   : > { %p1331_p8 = pnand %p1054_p6, %p39_p4  ;;  %s188_s28 = sand.u32 1, %s1255_s18  }
  0x10   : > { %s1523_s24 = scalar_select %p1323_p7, 1, 0 }
  0x11   : > { %s1341_s5 = scalar_lea.hbm %s1518_s1, %s989_s26  ;;  %s191_s6 = scalar_lea.vmem [#allocation8], %s1328_s25 }
  0x12   : > { %s198_s7 = sshll.u32 %s191_s6, 4  ;;  %s1345_s8 = scalar_lea.sflag [#allocation9], %s188_s28  ;;  %s199_s7 = int_to_ptr.vmem [resolvable:$true] %s198_s7 }
  0x13   : > { %s1101_s9 = scalar_lea.hbm %s1341_s5, 16  ;;  %p1351_p11 = pneg %p1331_p8 }
  0x14   : > { %p1102_p10 = scmp.ne.s32.totalorder %s1341_s5, %s1101_s9  ;;  %s1106_s13 = scalar_lea.hbm %s1518_s1, 32 }
  0x15   : > { %p1107_p0 = scmp.lt.s32.totalorder %s1341_s5, %s1518_s1  ;;  %p1108_p1 = scmp.lt.s32.totalorder %s1106_s13, %s1101_s9 }
  0x16   : > { %p1104_p12 = pnand %p1351_p11, %p1102_p10 }
  0x17   : > { %p1109_p2 = por %p1108_p1, %p1107_p0 }
  0x18   : > { %p1105_p13 = pneg %p1104_p12 }
  0x1a   : > { %p1110_p3 = pnand %p1109_p2, %p1105_p13 }
  0x1c   : > { %1113 = shalt.err (!%p1110_p3)
}
  0x1d   : > { %s1114_s21 = scalar_lea.vmem %s199_s7, 16  ;;  %s1257_s22 = smov [#allocation8]  }
  0x1e   : > { %p1115_p4 = scmp.ne.s32.totalorder %s199_s7, %s1114_s21  ;;  %s1119_s28 = sshll.u32 %s1257_s22, 4  ;;  %s1120_s28 = int_to_ptr.vmem [resolvable:$false] %s1119_s28 }
  0x1f   : > { %s1121_s29 = scalar_lea.vmem %s1120_s28, 32  ;;  %p1122_p10 = scmp.lt.s32.totalorder %s199_s7, %s1120_s28 }
  0x20   : > { %p1117_p5 = pnand %p1115_p4, %p1351_p11  ;;  %p1123_p12 = scmp.lt.s32.totalorder %s1121_s29, %s1114_s21 }
  0x22   : > { %p1118_p6 = pneg %p1117_p5  ;;  %p1124_p9 = por %p1123_p12, %p1122_p10 }
  0x24   : > { %p1125_p7 = pnand %p1124_p9, %p1118_p6 }
  0x26   : > { %1128 = shalt.err (!%p1125_p7)
}
  0x27   : > { %1047 = dma.hbm_to_vmem [thread:$0]  (!%p1331_p8), %s1341_s5, 16, %s199_s7, %s1345_s8  }
  0x28   : > { %p239_p13 = scmp.lt.s32.totalorder %s1255_s18, 3  ;;  %s1376_s9 = scalar_lea.hbm %s1517_s0, %s989_s26 }
  0x29   : > { %p1526_p7 = scmp.ge.s32.totalorder %s1255_s18, 1  ;;  %s174_s12 = scalar_lea.vmem [#allocation6], %s1328_s25 }
  0x2a   : > { %s181_s13 = sshll.u32 %s174_s12, 4  ;;  %s991_s14 = sshll.u32 %s1328_s25, 3  ;;  %s182_s13 = int_to_ptr.vmem [resolvable:$true] %s181_s13 }
  0x2b   : > { %p1380_p9 = pnand %p1526_p7, %p239_p13  ;;  %s172_s5 = scalar_lea.sflag [#allocation7], %s1328_s25 }
  0x2c   : > { %s1129_s7 = scalar_lea.hbm %s1376_s9, 16  ;;  %s1134_s21 = scalar_lea.hbm %s1517_s0, 32 }
  0x2d   : > { %s1527_s11 = scalar_select %p1380_p9, 1, 0 }
  0x2e   : > { %p1130_p0 = scmp.ne.s32.totalorder %s1376_s9, %s1129_s7  ;;  %p1135_p3 = scmp.lt.s32.totalorder %s1376_s9, %s1517_s0 }
  0x2f   : > { %p1136_p4 = scmp.lt.s32.totalorder %s1134_s21, %s1129_s7 }
  0x30   : > { %p1132_p1 = pnand %p1130_p0, %p1351_p11 }
  0x31   : > { %p1137_p5 = por %p1136_p4, %p1135_p3 }
  0x32   : > { %p1133_p2 = pneg %p1132_p1 }
  0x34   : > { %p1138_p6 = pnand %p1137_p5, %p1133_p2 }
  0x36   : > { %1141 = shalt.err (!%p1138_p6)
}
  0x37   : > { %s1142_s29 = scalar_lea.vmem %s182_s13, 16  ;;  %s1258_s30 = smov [#allocation6]  }
  0x38   : > { %p1143_p10 = scmp.ne.s32.totalorder %s182_s13, %s1142_s29  ;;  %s1147_s6 = sshll.u32 %s1258_s30, 4  ;;  %s1148_s6 = int_to_ptr.vmem [resolvable:$false] %s1147_s6 }
  0x39   : > { %s1149_s12 = scalar_lea.vmem %s1148_s6, 32  ;;  %p1150_p7 = scmp.lt.s32.totalorder %s182_s13, %s1148_s6 }
  0x3a   : > { %p1145_p12 = pnand %p1143_p10, %p1351_p11  ;;  %p1151_p0 = scmp.lt.s32.totalorder %s1149_s12, %s1142_s29 }
  0x3c   : > { %p1146_p13 = pneg %p1145_p12  ;;  %p1152_p1 = por %p1151_p0, %p1150_p7 }
  0x3e   : > { %p1153_p9 = pnand %p1152_p1, %p1146_p13 }
  0x40   : > { %1156 = shalt.err (!%p1153_p9)
}
  0x41   : > { %1044 = dma.hbm_to_vmem [thread:$0]  (!%p1331_p8), %s1376_s9, 16, %s182_s13, %s172_s5  }
  0x42   : > { %s992_s7 = sshll.u32 %s1255_s18, 7  ;;  %s209_s22 = scalar_lea.vmem [#allocation10], %s991_s14 }
  0x43   : > { %s214_s21 = scalar_lea.hbm %s1519_s2, %s992_s7  ;;  %s216_s28 = sshll.u32 %s209_s22, 4  ;;  %s217_s28 = int_to_ptr.vmem [resolvable:$true] %s216_s28 }
  0x44   : > { %s1157_s29 = scalar_lea.hbm %s214_s21, 128  ;;  %s1162_s12 = scalar_lea.hbm %s1519_s2, 256 }
  0x45   : > { %p1158_p9 = scmp.ne.s32.totalorder %s214_s21, %s1157_s29  ;;  %p1163_p4 = scmp.lt.s32.totalorder %s214_s21, %s1519_s2 }
  0x46   : > { %p1164_p5 = scmp.lt.s32.totalorder %s1162_s12, %s1157_s29 }
  0x47   : > { %p1160_p2 = pnand %p1158_p9, %p1351_p11 }
  0x48   : > { %p1165_p6 = por %p1164_p5, %p1163_p4 }
  0x49   : > { %p1161_p3 = pneg %p1160_p2 }
  0x4b   : > { %p1166_p10 = pnand %p1165_p6, %p1161_p3 }
  0x4d   : > { %1169 = shalt.err (!%p1166_p10)
}
  0x4e   : > { %s1170_s5 = scalar_lea.vmem %s217_s28, 128  ;;  %s1259_s26 = smov [#allocation10]  }
  0x4f   : > { %p1171_p12 = scmp.ne.s32.totalorder %s217_s28, %s1170_s5  ;;  %s1175_s15 = sshll.u32 %s1259_s26, 4  ;;  %s1176_s15 = int_to_ptr.vmem [resolvable:$false] %s1175_s15 }
  0x50   : > { %s1177_s22 = scalar_lea.vmem %s1176_s15, 256  ;;  %p1178_p0 = scmp.lt.s32.totalorder %s217_s28, %s1176_s15 }
  0x51   : > { %p1173_p13 = pnand %p1171_p12, %p1351_p11  ;;  %p1179_p1 = scmp.lt.s32.totalorder %s1177_s22, %s1170_s5 }
  0x53   : > { %p1174_p7 = pneg %p1173_p13  ;;  %p1180_p9 = por %p1179_p1, %p1178_p0 }
  0x55   : > { %p1181_p2 = pnand %p1180_p9, %p1174_p7 }
  0x57   : > { %1184 = shalt.err (!%p1181_p2)
}
  0x58   : > { %1050 = dma.hbm_to_vmem [thread:$0]  (!%p1331_p8), %s214_s21, 128, %s217_s28, %s1345_s8  }
  0x59   : > { %s1429_s6 = scalar_lea.hbm %s1520_s3, %s992_s7  ;;  %s227_s12 = scalar_lea.vmem [#allocation11], %s991_s14 }
  0x5a   : > { %s234_s9 = sshll.u32 %s227_s12, 4  ;;  %s224_s13 = scalar_lea.sflag [#allocation12], %s1328_s25  ;;  %s235_s9 = int_to_ptr.vmem [resolvable:$true] %s234_s9 }
  0x5b   : > { %s1185_s5 = scalar_lea.hbm %s1429_s6, 128  ;;  %s1190_s21 = scalar_lea.hbm %s1520_s3, 256 }
  0x5c   : > { %p1186_p3 = scmp.ne.s32.totalorder %s1429_s6, %s1185_s5  ;;  %p1191_p6 = scmp.lt.s32.totalorder %s1429_s6, %s1520_s3 }
  0x5d   : > { %p1192_p10 = scmp.lt.s32.totalorder %s1190_s21, %s1185_s5 }
  0x5e   : > { %p1188_p4 = pnand %p1186_p3, %p1351_p11 }
  0x5f   : > { %p1193_p12 = por %p1192_p10, %p1191_p6 }
  0x60   : > { %p1189_p5 = pneg %p1188_p4 }
  0x62   : > { %p1194_p13 = pnand %p1193_p12, %p1189_p5 }
  0x64   : > { %1197 = shalt.err (!%p1194_p13)
}
  0x65   : > { %s1198_s14 = scalar_lea.vmem %s235_s9, 128  ;;  %s1260_s25 = smov [#allocation11]  }
  0x66   : > { %p1199_p7 = scmp.ne.s32.totalorder %s235_s9, %s1198_s14  ;;  %s1203_s26 = sshll.u32 %s1260_s25, 4  ;;  %s1204_s26 = int_to_ptr.vmem [resolvable:$false] %s1203_s26 }
  0x67   : > { %s1205_s15 = scalar_lea.vmem %s1204_s26, 256  ;;  %p1206_p9 = scmp.lt.s32.totalorder %s235_s9, %s1204_s26 }
  0x68   : > { %p1201_p0 = pnand %p1199_p7, %p1351_p11  ;;  %p1207_p2 = scmp.lt.s32.totalorder %s1205_s15, %s1198_s14 }
  0x6a   : > { %p1202_p1 = pneg %p1201_p0  ;;  %p1208_p3 = por %p1207_p2, %p1206_p9 }
  0x6c   : > { %p1209_p4 = pnand %p1208_p3, %p1202_p1 }
  0x6e   : > { %1212 = shalt.err (!%p1209_p4)
}
  0x6f   : > { %1053 = dma.hbm_to_vmem [thread:$0]  (!%p1331_p8), %s1429_s6, 128, %s235_s9, %s224_s13  }
  0x70   : > { %p1528_p5 = scmp.ne.s32.totalorder %s1527_s11, 0 }
  0x71   : > { %s245_s10 = sand.u32 (!%p1528_p5), 1, %s1247_s16   ;;  %p1529_p11 = scmp.ne.s32.totalorder (!%p1528_p5), %s1523_s24, 0 }
  0x72   : > { %243 = sbr.rel (%p1528_p5) target bundleno = 663 (0x297), region = 36  ;;  %s246_s22 = scalar_lea.sflag (!%p1528_p5), [#allocation7], %s245_s10 }
  0x73   : > { %s248_s29 = scalar_lea.vmem (!%p1528_p5), [#allocation6], %s245_s10 }
  0x77   : > { %1230 = dma.done.wait (%p1529_p11), %s246_s22, 16  }
  0x78   : > { %1232 = vsyncadd (%p1529_p11), %s246_s22, 4294967280  ;;  %s253_s30 = sand.u32 1, %s1306_s19   ;;  %s256_s27 = scalar_lea.vmem [#allocation8], %s245_s10 }
  0x79   : > { %s254_s12 = scalar_lea.sflag [#allocation9], %s253_s30 }
  0x7a   : > { %1234 = dma.done.wait (%p1529_p11), %s254_s12, 144  }
  0x7b   : > { %1236 = vsyncadd (%p1529_p11), %s254_s12, 4294967152  ;;  %s996_s11 = sshll.u32 %s245_s10, 3  ;;  %s271_s9 = scalar_lea.sflag [#allocation12], %s245_s10 }
  0x7c   : > { %s265_s6 = scalar_lea.vmem [#allocation10], %s996_s11  ;;  %s274_s13 = scalar_lea.vmem [#allocation11], %s996_s11 }
  0x7d   : > { %1238 = dma.done.wait (%p1529_p11), %s271_s9, 128  }
  0x7e   : > { %1240 = vsyncadd (%p1529_p11), %s271_s9, 4294967168  ;;  %v317_v0 = vlaneseq  ;;  %v314_v3 = vld [vmem:[%s248_s29] sm:$0x1]  ;;  %v1261_v5 = vmov 0   ;;  %vm323_vm2 = vcmask 130048   ;;  %v335_v10 = vld [vmem:[%s274_s13] sm:$0xff] }
  0x7f   : > { %vm315_vm0 = vcmp.eq.f32.partialorder %v314_v3, 0.0  ;;  %v336_v4 = vld [vmem:[%s256_s27] sm:$0x1]  ;;  %vm333_vm5 = vcmask 122880   ;;  %vm390_vm6 = vcmask 64512   ;;  %p310_p8 = scmp.lt.s32.totalorder %s1306_s19, 1 }
  0x80   : > { %v1467_v1 = vshrl.u32 %v317_v0, 7  ;;  %v316_v6 = vsel %vm315_vm0, 1, %v1261_v5  ;;  %vm337_vm1 = vcmp.eq.f32.partialorder %v336_v4, 0.0  ;;  %v313_v7 = vld [vmem:[%s265_s6] sm:$0xff]  ;;  %v661_v3 = vand.u32 127, %v317_v0 }
  0x81   : > { %v338_v9 = vsel %vm337_vm1, 1, %v1261_v5  ;;  %s1535_s19 = smov (!%p310_p8, %s1306_s19), 1 }
  0x82   : > { %v319_v2 = vsub.s32 0, %v1467_v1  ;;  %vm662_vm8 = vcmp.eq.s32.totalorder %v1467_v1, %v661_v3  ;;  %s312_s8 = scalar_lea.vmem %s1521_s4, %s1535_s19 }
  0x84   : > { %v320_v8 = vrot.slane %v316_v6, %v319_v2  ;;  %v342_v11 = vrot.slane %v338_v9, %v319_v2  ;;  %v659_v2 = vadd.s32 8, %v1467_v1 }
  0x86   : > { %vm321_vm3 = vcmp.eq.s32.totalorder %v320_v8, 1  ;;  %vm343_vm4 = vcmp.eq.s32.totalorder %v342_v11, 1  ;;  %vm663_vm7 = vcmp.eq.s32.totalorder %v659_v2, %v661_v3 }
  0x87   : > { %v322_v12 = vsel %vm321_vm3, 0.0, %v313_v7  ;;  %v344_v13 = vsel %vm343_vm4, 0.0, %v335_v10 }
  0x88   : > { %324 = vst.msk [vmem:[#allocation2] sm:$0xff] %vm323_vm2, %v322_v12  ;;  %345 = vst.msk [vmem:[#allocation3] sm:$0xff] %vm323_vm2, %v344_v13  ;;  %v325_v16 = vmul.f32 %v322_v12, %v322_v12  ;;  %v346_v24 = vmul.f32 %v344_v13, %v344_v13 }
  0x8a   : > { %v326_v17 = vsel %vm323_vm2, %v325_v16, 0.0  ;;  %v347_v25 = vsel %vm323_vm2, %v346_v24, 0.0 }
  0x8b   : > { %v327_v18 = vrot.slane %v326_v17, 4  ;;  %v348_v28 = vrot.slane %v347_v25, 4 }
  0x8d   : > { %v328_v19 = vadd.f32 %v327_v18, %v326_v17  ;;  %v349_v30 = vadd.f32 %v348_v28, %v347_v25 }
  0x8f   : > { %v355_v14 = vld [vmem:[#allocation2] sm:$0xff]  ;;  %v692_v15 = vld [vmem:[#allocation3] sm:$0xff]  ;;  %v329_v20 = vrot.slane %v328_v19, 2  ;;  %v350_v34 = vrot.slane %v349_v30, 2 }
  0x90   : > { %356 = vxpose.xlu0.b32.start.end [1/1] (short) (narrow) %v355_v14, 16  ;;  %1023 = vmatprep.subr.mxu1 %v355_v14 }
  0x91   : > { %693 = vxpose.xlu1.b32.start.end [1/1] (short) (narrow) %v692_v15, 16  ;;  %1018 = vmatprep.subr.mxu0 %v692_v15  ;;  %v330_v21 = vadd.f32 %v329_v20, %v328_v19  ;;  %v351_v38 = vadd.f32 %v350_v34, %v349_v30 }
  0x92   : > { %1019 = vmatpush3.msra.mxu0 %v692_v15  ;;  %1024 = vmatpush3.msra.mxu1 %v355_v14 }
  0x93   : > { %1028 = vmatprep.subr.mxu0 %v692_v15  ;;  %v331_v22 = vrot.slane %v330_v21, 1  ;;  %v352_v40 = vrot.slane %v351_v38, 1 }
  0x95   : > { %521 = vxpose.xlu0.b32.start.end [1/1] (short) (narrow) %v355_v14, 16  ;;  %v332_v23 = vadd.f32 %v331_v22, %v330_v21  ;;  %v353_v45 = vadd.f32 %v352_v40, %v351_v38 }
  0x97   : > { %334 = vst.msk [vmem:[#allocation4] sm:$0x1] %vm333_vm5, %v332_v23  ;;  %354 = vst.msk [vmem:[#allocation5] sm:$0x1] %vm333_vm5, %v353_v45 }
  0x9e   : > { %v1006_v55 = vld [vmem:[#allocation5] ss:$0 sm:$0xff]  ;;  %v1003_v11 = vld [vmem:[#allocation4] ss:$0 sm:$0xff] }
 0x10c   : > { %v372_v26 = vpop.trf.xlu0 }
 0x10d   : > { %1020 = vmatprep.mubr.msk.f32.mxu0 %vm390_vm6, %v372_v26  ;;  %v709_v27 = vpop.trf.xlu1  ;;  %v388_v46 = vmul.f32 %v372_v26, %v372_v26 }
 0x10e   : > { %v725_v35 = vmul.f32 %v709_v27, %v709_v27 }
 0x10f   : > { %v391_v49 = vsel %vm390_vm6, %v388_v46, 0.0 }
 0x110   : > { %v373_v29 = vpop.trf.xlu0  ;;  %v727_v43 = vsel %vm390_vm6, %v725_v35, 0.0 }
 0x111   : > { %1021 = vmatmul.mubr.msk.f32.vlgmr.msra.gmra.mxu0 %vm390_vm6, %v373_v29  ;;  %v710_v31 = vpop.trf.xlu1  ;;  %v389_v41 = vmul.f32 %v373_v29, %v373_v29 }
 0x112   : > { %1029 = vmatpush3.msra.mxu0 %v692_v15  ;;  %1030 = vmatprep.mubr.msk.f32.mxu0 %vm390_vm6, %v709_v27  ;;  %v726_v42 = vmul.f32 %v710_v31, %v710_v31 }
 0x113   : > { %v394_v48 = vsel %vm390_vm6, %v389_v41, 0.0 }
 0x114   : > { %v537_v32 = vpop.trf.xlu0  ;;  %v730_v47 = vsel %vm390_vm6, %v726_v42, 0.0 }
 0x115   : > { %v553_v33 = vmul.f32 %v537_v32, %v537_v32  ;;  %1025 = vmatprep.mubr.msk.f32.mxu1 %vm390_vm6, %v537_v32  ;;  %1031 = vmatmul.mubr.msk.f32.vlgmr.msra.gmra.mxu0 %vm390_vm6, %v710_v31 }
 0x117   : > { %v555_v36 = vsel %vm390_vm6, %v553_v33, 0.0 }
 0x118   : > { %556 = vadd.xlane.f32.xlu1 %v555_v36  ;;  %v538_v37 = vpop.trf.xlu0 }
 0x119   : > { %v554_v39 = vmul.f32 %v538_v37, %v538_v37  ;;  %1026 = vmatmul.mubr.msk.f32.vlgmr.msra.gmra.mxu1 %vm390_vm6, %v538_v37 }
 0x11b   : > { %v558_v44 = vsel %vm390_vm6, %v554_v39, 0.0 }
 0x11c   : > { %728 = vadd.xlane.f32.xlu1 %v727_v43  ;;  %559 = vadd.xlane.f32.xlu0 %v558_v44 }
 0x120   : > { %731 = vadd.xlane.f32.xlu1 %v730_v47  ;;  %395 = vadd.xlane.f32.xlu0 %v394_v48 }
 0x124   : > { %392 = vadd.xlane.f32.xlu1 %v391_v49 }
 0x1a1   : > { %v557_v50 = vpop.xlane.xlu1 %556 }
 0x1a2   : > { %v649_v0 = vadd.f32 %v1003_v11, %v557_v50 }
 0x1a5   : > { %v729_v51 = vpop.xlane.xlu1 %728  ;;  %v560_v52 = vpop.xlane.xlu0 %559 }
 0x1a6   : > { %v821_v9 = vadd.f32 %v1006_v55, %v729_v51  ;;  %v650_v15 = vadd.f32 %v1003_v11, %v560_v52 }
 0x1a9   : > { %v732_v53 = vpop.xlane.xlu1 %731  ;;  %v396_v54 = vpop.xlane.xlu0 %395 }
 0x1aa   : > { %v487_v58 = vadd.f32 %v1006_v55, %v396_v54  ;;  %v822_v5 = vadd.f32 %v1006_v55, %v732_v53 }
 0x1ad   : > { %v393_v56 = vpop.xlane.xlu1 %392 }
 0x1ae   : > { %v486_v61 = vadd.f32 %v1006_v55, %v393_v56 }
 0x1d1   : > { %v1022_v57 = vpop.f32.mrf.mxu0 }
 0x1d2   : > { %v489_v59 = vmul.f32 2.0, %v1022_v57 }
 0x1d3   : > { %v471_v60 = vpop.f32.mrf.mxu0 }
 0x1d4   : > { %v491_v62 = vsub.f32 %v487_v58, %v489_v59  ;;  %v488_v63 = vmul.f32 2.0, %v471_v60 }
 0x1d5   : > { %v1032_v4 = vpop.f32.mrf.mxu0 }
 0x1d6   : > { %v493_v6 = vmax.f32 %v491_v62, 0.0  ;;  %v490_v7 = vsub.f32 %v486_v61, %v488_v63  ;;  %v824_v8 = vmul.f32 2.0, %v1032_v4 }
 0x1d7   : > { %v806_v10 = vpop.f32.mrf.mxu0 }
 0x1d8   : > { %1089 = vrsqrt.f32 %v493_v6  ;;  %v492_v12 = vmax.f32 %v490_v7, 0.0  ;;  %v826_v13 = vsub.f32 %v822_v5, %v824_v8  ;;  %v823_v14 = vmul.f32 2.0, %v806_v10 }
 0x1d9   : > { %v1027_v16 = vpop.f32.mrf.mxu1  ;;  %vm503_vm9 = vcmp.eq.f32.partialorder %v493_v6, inf  ;;  %v506_v33 = vand.u32 2147483648, %v493_v6  ;;  %vm505_vm10 = vcmp.eq.f32.partialorder %v493_v6, 0.0 }
 0x1da   : > { %1091 = vrsqrt.f32 %v492_v12  ;;  %v828_v17 = vmax.f32 %v826_v13, 0.0  ;;  %v825_v18 = vsub.f32 %v821_v9, %v823_v14  ;;  %v652_v19 = vmul.f32 2.0, %v1027_v16 }
 0x1db   : > { %v634_v20 = vpop.f32.mrf.mxu1  ;;  %vm496_vm11 = vcmp.eq.f32.partialorder %v492_v12, inf  ;;  %v499_v36 = vand.u32 2147483648, %v492_v12  ;;  %vm498_vm12 = vcmp.eq.f32.partialorder %v492_v12, 0.0 }
 0x1dc   : > { %v830_v21 = vsel %vm663_vm7, 0.0, %v828_v17  ;;  %v827_v22 = vmax.f32 %v825_v18, 0.0  ;;  %v654_v23 = vsub.f32 %v650_v15, %v652_v19  ;;  %v651_v24 = vmul.f32 2.0, %v634_v20 }
 0x1dd   : > { %1093 = vrsqrt.f32 %v830_v21  ;;  %vm840_vm13 = vcmp.eq.f32.partialorder %v830_v21, inf  ;;  %v843_v45 = vand.u32 2147483648, %v830_v21  ;;  %vm842_vm14 = vcmp.eq.f32.partialorder %v830_v21, 0.0 }
 0x1de   : > { %v829_v25 = vsel %vm662_vm8, 0.0, %v827_v22  ;;  %v656_v26 = vmax.f32 %v654_v23, 0.0  ;;  %v653_v27 = vsub.f32 %v649_v0, %v651_v24 }
 0x1df   : > { %1095 = vrsqrt.f32 %v829_v25  ;;  %vm833_vm15 = vcmp.eq.f32.partialorder %v829_v25, inf  ;;  %v836_v50 = vand.u32 2147483648, %v829_v25  ;;  %vm835_vm0 = vcmp.eq.f32.partialorder %v829_v25, 0.0 }
 0x1e0   : > { %v665_v28 = vsel %vm663_vm7, 0.0, %v656_v26  ;;  %v655_v29 = vmax.f32 %v653_v27, 0.0 }
 0x1e1   : > { %1097 = vrsqrt.f32 %v665_v28  ;;  %vm675_vm1 = vcmp.eq.f32.partialorder %v665_v28, inf  ;;  %vm677_vm3 = vcmp.eq.f32.partialorder %v665_v28, 0.0  ;;  %v678_v56 = vand.u32 2147483648, %v665_v28 }
 0x1e2   : > { %v664_v30 = vsel %vm662_vm8, 0.0, %v655_v29 }
 0x1e3   : > { %1099 = vrsqrt.f32 %v664_v30  ;;  %vm668_vm4 = vcmp.eq.f32.partialorder %v664_v30, inf  ;;  %v671_v62 = vand.u32 2147483648, %v664_v30  ;;  %vm670_vm5 = vcmp.eq.f32.partialorder %v664_v30, 0.0 }
 0x1e5   : > { %v1090_v31 = vpop.eup %1089 }
 0x1e6   : > { %v502_v32 = vmul.f32 %v1090_v31, %v493_v6 }
 0x1e7   : > { %v1092_v1 = vpop.eup %1091 }
 0x1e8   : > { %v495_v34 = vmul.f32 %v1092_v1, %v492_v12  ;;  %v504_v35 = vsel %vm503_vm9, %v493_v6, %v502_v32 }
 0x1e9   : > { %v507_v37 = vsel %vm505_vm10, %v506_v33, %v504_v35 }
 0x1ea   : > { %v1094_v38 = vpop.eup %1093  ;;  %v497_v39 = vsel %vm496_vm11, %v492_v12, %v495_v34  ;;  %v509_v44 = vsel %vm323_vm2, %v507_v37, 0.0 }
 0x1eb   : > { %v500_v40 = vsel %vm498_vm12, %v499_v36, %v497_v39  ;;  %v839_v41 = vmul.f32 %v1094_v38, %v830_v21 }
 0x1ec   : > { %v1096_v42 = vpop.eup %1095  ;;  %v508_v43 = vsel %vm323_vm2, %v500_v40, 0.0 }
 0x1ed   : > { %v510_v46 = vadd.f32 %v509_v44, %v508_v43  ;;  %v832_v47 = vmul.f32 %v1096_v42, %v829_v25  ;;  %v841_v48 = vsel %vm840_vm13, %v830_v21, %v839_v41 }
 0x1ee   : > { %v1098_v49 = vpop.eup %1097  ;;  %v844_v51 = vsel %vm842_vm14, %v843_v45, %v841_v48 }
 0x1ef   : > { %511 = vadd.xlane.f32.xlu1 %v510_v46  ;;  %v834_v52 = vsel %vm833_vm15, %v829_v25, %v832_v47  ;;  %v674_v53 = vmul.f32 %v1098_v49, %v665_v28  ;;  %v846_v58 = vsel %vm323_vm2, %v844_v51, 0.0 }
 0x1f0   : > { %v1100_v54 = vpop.eup %1099  ;;  %v837_v55 = vsel %vm835_vm0, %v836_v50, %v834_v52 }
 0x1f1   : > { %v845_v57 = vsel %vm323_vm2, %v837_v55, 0.0  ;;  %v667_v59 = vmul.f32 %v1100_v54, %v664_v30  ;;  %v676_v60 = vsel %vm675_vm1, %v665_v28, %v674_v53 }
 0x1f2   : > { %v847_v61 = vadd.f32 %v846_v58, %v845_v57  ;;  %v679_v63 = vsel %vm677_vm3, %v678_v56, %v676_v60 }
 0x1f3   : > { %v669_v2 = vsel %vm668_vm4, %v664_v30, %v667_v59  ;;  %v681_v5 = vsel %vm323_vm2, %v679_v63, 0.0 }
 0x1f4   : > { %848 = vadd.xlane.f32.xlu1 %v847_v61  ;;  %v672_v3 = vsel %vm670_vm5, %v671_v62, %v669_v2 }
 0x1f5   : > { %v680_v4 = vsel %vm323_vm2, %v672_v3, 0.0  ;;  %vm865_vm2 = vcmask 0  }
 0x1f6   : > { %v682_v6 = vadd.f32 %v681_v5, %v680_v4 }
 0x1f8   : > { %683 = vadd.xlane.f32.xlu0 %v682_v6 }
 0x278   : > { %v512_v7 = vpop.xlane.xlu1 %511 }
 0x279   : > { %v513_v8 = vrot.slane %v512_v7, 4 }
 0x27b   : > { %v514_v9 = vadd.f32 %v513_v8, %v512_v7 }
 0x27d   : > { %v849_v10 = vpop.xlane.xlu1 %848  ;;  %v515_v12 = vrot.slane %v514_v9, 2 }
 0x27e   : > { %v850_v11 = vrot.slane %v849_v10, 4 }
 0x27f   : > { %v516_v17 = vadd.f32 %v515_v12, %v514_v9 }
 0x280   : > { %v851_v13 = vadd.f32 %v850_v11, %v849_v10 }
 0x281   : > { %v684_v14 = vpop.xlane.xlu0 %683  ;;  %v517_v21 = vrot.slane %v516_v17, 1 }
 0x282   : > { %v852_v15 = vrot.slane %v851_v13, 2  ;;  %v685_v16 = vrot.slane %v684_v14, 4 }
 0x283   : > { %v518_v25 = vadd.f32 %v517_v21, %v516_v17 }
 0x284   : > { %v853_v18 = vadd.f32 %v852_v15, %v851_v13  ;;  %v686_v19 = vadd.f32 %v685_v16, %v684_v14 }
 0x285   : > { %v858_v29 = vmul.f32 0.00390625, %v518_v25 }
 0x286   : > { %v854_v0 = vrot.slane %v853_v18, 1  ;;  %v687_v20 = vrot.slane %v686_v19, 2 }
 0x288   : > { %v688_v22 = vadd.f32 %v687_v20, %v686_v19  ;;  %v855_v23 = vadd.f32 %v854_v0, %v853_v18 }
 0x28a   : > { %v689_v24 = vrot.slane %v688_v22, 1  ;;  %v862_v27 = vmul.f32 0.5, %v855_v23 }
 0x28c   : > { %v690_v26 = vadd.f32 %v689_v24, %v688_v22  ;;  %v863_v31 = vmul.f32 0.00390625, %v862_v27 }
 0x28e   : > { %v859_v28 = vmul.f32 0.5, %v690_v26 }
 0x290   : > { %v860_v30 = vmul.f32 0.00390625, %v859_v28 }
 0x292   : > { %v861_v32 = vsub.f32 %v858_v29, %v860_v30 }
 0x294   : > { %v864_v1 = vsub.f32 %v861_v32, %v863_v31 }
 0x296   : > { %866 = vst.msk [vmem:[%s312_s8] sm:$0x1] %vm865_vm2, %v864_v1 }
 0x297 PF: > { %p20_p6 = scmp.ge.s32.totalorder %s1309_s20, 4   ;;  %s1530_s15 = smov %s1247_s16 }
 0x298   : > { %s1531_s16 = smov %s1251_s17  ;;  %s1532_s17 = smov %s1319_s23 }
 0x299   : > { %s1533_s18 = smov %s1309_s20  ;;  %22 = sbr.rel (!%p20_p6) target bundleno = 7 (0x7), region = 113 }
 0x29e   :  { %884 = vsyncpa [#allocation7], 1 }
 0x29f   :  { %886 = vsyncpa [#allocation7 + $0x1], 1 }
 0x2a0   :  { %887 = vsyncpa [#allocation9], 1 }
 0x2a1   :  { %889 = vsyncpa [#allocation9 + $0x1], 1 }
 0x2a2   :  { %890 = vsyncpa [#allocation12], 1 }
 0x2a3   :  { %892 = vsyncpa [#allocation12 + $0x1], 1 }

</bundles_post_ra>
